<compile_context>
chip_gen: v7x
topology: tpu7x:2x2x1
jax: 0.10.0
libtpu: 0.0.40
codegen_flags: <defaults>
</compile_context>

<pallas_src>
import re

import jax
import jax.numpy as jnp
from jax.experimental import pallas as pl
from jax.experimental.pallas import tpu as pltpu


def _tpu_generation():
    """Best-effort TPU generation (e.g. 5, 6, 7) from the default device."""
    try:
        dev = jax.devices()[0]
        if dev.platform != "tpu":
            return None
        m = re.search(r"(\d+)", dev.device_kind)
        return int(m.group(1)) if m else None
    except Exception:  # pragma: no cover - defensive
        return None


def _sublane_multiple(dtype) -> int:
    """Preferred second-to-last block-dim multiple for a dtype (vreg packing)."""
    itemsize = jnp.dtype(dtype).itemsize
    return max(8, 32 // max(1, itemsize))  # 8 for 4B, 16 for 2B, 32 for 1B


def _generation_config(gen):
    """Return (target_block_bytes, vmem_ceiling_bytes, upcast_subword_floats)."""
    if gen is not None and gen >= 7:
        # v7x: only 64 MiB VMEM per TensorCore; native bf16 VPU/EUP -> no upcast.
        return 4 << 20, 48 << 20, False
    if gen == 6:
        # v6e: 128 MiB physical VMEM; native bf16 VPU/EUP -> big tiles, no upcast.
        return 8 << 20, 64 << 20, False
    # v5e / unknown: conservative tiles; no bf16 VPU/EUP -> upcast sub-32-bit floats.
    return 2 << 20, 32 << 20, True


def _pick_lanes(n):
    """Widest lane count (multiple of 128) that divides n, else None."""
    for cand in (1024, 512, 256, 128):
        if n % cand == 0:
            return cand
    return None


def _pick_tile_rows(rows, rows_target, sub_mult):
    """Largest legal tile_rows <= rows_target, preferring exact divisors of
    `rows` so every grid step is full-width (unmasked stores)."""
    if rows <= max(rows_target, sub_mult):
        return rows  # single block equal to the full row extent (always legal)
    t = max(sub_mult, (rows_target // sub_mult) * sub_mult)
    if rows % sub_mult == 0:
        tt = t
        while tt >= sub_mult:
            if rows % tt == 0:
                return tt
            tt -= sub_mult
    return t  # non-dividing fallback: Pallas masks the partial last block


def _make_lambda_kernel(lambda_fn, upcast_subword_floats):
    def kernel(x_ref, o_ref):
        x = x_ref[...]
        if (upcast_subword_floats
                and jnp.issubdtype(x.dtype, jnp.floating)
                and jnp.dtype(x.dtype).itemsize < 4):
            x = x.astype(jnp.float32)
        o_ref[...] = lambda_fn(x).astype(o_ref.dtype)
    return kernel


def lambda_module_pallas(lambda_fn, *, xla_fallback_elements=65536,
                         target_block_bytes=None, compute_in_f32="auto"):
    """Return a callable equivalent to LambdaModule(lambda_fn).forward for
    elementwise, shape/dtype-preserving lambdas, executed in a Pallas kernel."""
    gen = _tpu_generation()
    gen_block_bytes, vmem_ceiling, gen_upcast = _generation_config(gen)
    block_bytes = int(target_block_bytes) if target_block_bytes else gen_block_bytes
    upcast = gen_upcast if compute_in_f32 == "auto" else bool(compute_in_f32)
    kernel = _make_lambda_kernel(lambda_fn, upcast)

    def _run_2d(x2d, rows, lanes, orig_dtype):
        itemsize = jnp.dtype(orig_dtype).itemsize
        sub_mult = _sublane_multiple(orig_dtype)
        # When sub-32-bit floats are upcast inside the kernel, budget the block
        # as if it were f32 (accounts for the in-kernel f32 temporaries).
        upcast_here = (upcast and jnp.issubdtype(orig_dtype, jnp.floating)
                       and itemsize < 4)
        sizing_itemsize = 4 if upcast_here else itemsize
        rows_target = max(sub_mult, block_bytes // (lanes * sizing_itemsize))

        # v7x has 2 TensorCores: make sure large inputs give >= 2 grid steps so
        # dimension_semantics=("parallel",) can shard the DMA streams.
        if (gen is not None and gen >= 7 and rows % sub_mult == 0
                and rows * lanes * itemsize >= (2 << 20)):
            rows_target = min(rows_target, max(sub_mult, rows // 2))

        tile_rows = _pick_tile_rows(rows, rows_target, sub_mult)
        grid = (pl.cdiv(rows, tile_rows),)

        # Explicit VMEM budget: 2x(in) + 2x(out) double buffers + upcast scratch.
        block_in_bytes = tile_rows * lanes * itemsize
        scratch_bytes = tile_rows * lanes * 4 if upcast_here else 0
        vmem_needed = 4 * block_in_bytes + scratch_bytes + (2 << 20)
        vmem_limit = int(min(max(vmem_needed, 16 << 20), vmem_ceiling))

        n = rows * lanes
        return pl.pallas_call(
            kernel,
            out_shape=jax.ShapeDtypeStruct((rows, lanes), orig_dtype),
            grid_spec=pltpu.PrefetchScalarGridSpec(
                num_scalar_prefetch=0,
                grid=grid,
                in_specs=[pl.BlockSpec((tile_rows, lanes), lambda i: (i, 0))],
                out_specs=pl.BlockSpec((tile_rows, lanes), lambda i: (i, 0)),
            ),
            compiler_params=pltpu.CompilerParams(
                dimension_semantics=("parallel",),
                vmem_limit_bytes=vmem_limit,
            ),
            cost_estimate=pl.CostEstimate(
                flops=2 * n,
                transcendentals=n,
                bytes_accessed=2 * n * itemsize,
            ),
        )(x2d)

    def forward(x):
        orig_shape, orig_dtype = x.shape, x.dtype
        n = x.size
        if n == 0 or n < xla_fallback_elements:
            # pallas_call fixed overhead dominates tiny inputs -> plain XLA.
            return lambda_fn(x).astype(orig_dtype)

        lanes = _pick_lanes(n)
        if lanes is not None:
            # Common case: pure reshapes around a single HBM pass.
            rows = n // lanes
            out2d = _run_2d(x.reshape(rows, lanes), rows, lanes, orig_dtype)
            return out2d.reshape(orig_shape)

        # Ragged element count: run the kernel on the 128-aligned prefix and
        # finish the (<128-element) tail with plain XLA.  No full-array
        # pad/slice round trips.
        x_flat = x.reshape(-1)
        n_al = (n // 128) * 128
        if n_al == 0:
            return lambda_fn(x).astype(orig_dtype)
        lanes = _pick_lanes(n_al)
        rows = n_al // lanes
        head = _run_2d(x_flat[:n_al].reshape(rows, lanes), rows, lanes, orig_dtype)
        tail = lambda_fn(x_flat[n_al:]).astype(orig_dtype)
        return jnp.concatenate([head.reshape(-1), tail]).reshape(orig_shape)

    return forward


if __name__ == "__main__":
    # Concrete lambda (the PyTorch module just stores & applies it).
    lambda_fn = lambda x: jnp.tanh(x) * 2.0 + 0.5  # noqa: E731

    # Force the Pallas path even for tiny demo shapes; production would keep
    # the default XLA fallback threshold for sub-64K-element inputs.
    module = lambda_module_pallas(lambda_fn, xla_fallback_elements=0)
    module_default = lambda_module_pallas(lambda_fn)

    key = jax.random.PRNGKey(0)
    k0, k1, k2, k3 = jax.random.split(key, 4)

    # 1) Small NCHW-style input -> single full-extent block Pallas path.
    x = jax.random.normal(k0, (2, 4, 16, 16), dtype=jnp.float32)
    y = jax.block_until_ready(module(x))
    assert y.shape == x.shape and y.dtype == x.dtype
    assert jnp.allclose(y, lambda_fn(x), atol=1e-5, rtol=1e-5)

    # 2) Ragged element count -> 128-aligned prefix in Pallas + jnp tail.
    x_odd = jax.random.normal(k1, (3, 5, 7, 11), dtype=jnp.float32)
    y_odd = jax.block_until_ready(module(x_odd))
    assert y_odd.shape == x_odd.shape and y_odd.dtype == x_odd.dtype
    assert jnp.allclose(y_odd, lambda_fn(x_odd), atol=1e-5, rtol=1e-5)

    # 3) Larger input via the default-threshold module -> tiled, pipelined path.
    x_big = jax.random.normal(k2, (2048, 1024), dtype=jnp.float32)
    y_big = jax.block_until_ready(module_default(x_big))
    assert jnp.allclose(y_big, lambda_fn(x_big), atol=1e-5, rtol=1e-5)

    # 4) bf16 input -> generation-aware compute dtype (bf16 on v6e/v7x, f32 on v5e).
    x_bf16 = jax.random.normal(k3, (4, 8, 32), dtype=jnp.float32).astype(jnp.bfloat16)
    y_bf16 = jax.block_until_ready(module(x_bf16))
    assert y_bf16.dtype == jnp.bfloat16
    assert jnp.allclose(y_bf16.astype(jnp.float32),
                        lambda_fn(x_bf16.astype(jnp.float32)),
                        atol=3e-2, rtol=3e-2)

    print("KERNEL_OK")
</pallas_src>

<mosaic_0001>
module attributes {stable_mosaic.version = 11 : i64} {
  func.func @kernel(%arg0: i32, %arg1: memref<2x1024xf32, #tpu.memory_space<vmem>>, %arg2: memref<2x1024xf32, #tpu.memory_space<vmem>>) attributes {dimension_semantics = [#tpu.dimension_semantics<parallel>], iteration_bounds = array<i64: 1>, scalar_prefetch = 0 : i64, scratch_operands = 0 : i64, tpu.core_type = #tpu.core_type<tc>, window_params = [{transform_indices = @transform_0, window_bounds = array<i64: 2, 1024>}, {transform_indices = @transform_1, window_bounds = array<i64: 2, 1024>}]} {
    %c0 = arith.constant 0 : index
    %c0_0 = arith.constant 0 : index
    %0 = vector.load %arg1[%c0, %c0_0] : memref<2x1024xf32, #tpu.memory_space<vmem>>, vector<2x1024xf32>
    %1 = math.tanh %0 : vector<2x1024xf32>
    %cst = arith.constant 2.000000e+00 : f32
    %2 = vector.broadcast %cst : f32 to vector<2x1024xf32>
    %3 = arith.mulf %1, %2 : vector<2x1024xf32>
    %cst_1 = arith.constant 5.000000e-01 : f32
    %4 = vector.broadcast %cst_1 : f32 to vector<2x1024xf32>
    %5 = arith.addf %3, %4 : vector<2x1024xf32>
    %c0_2 = arith.constant 0 : index
    %c0_3 = arith.constant 0 : index
    %6 = vector.load %arg2[%c0_2, %c0_3] : memref<2x1024xf32, #tpu.memory_space<vmem>>, vector<2x1024xf32>
    tpu.vector_store %arg2[%c0_2, %c0_3], %5 {strides = array<i32>} : memref<2x1024xf32, #tpu.memory_space<vmem>>, vector<2x1024xf32>,
    return
  }
  func.func @transform_0(%arg0: i32) -> (i32, i32) {
    %c0_i32 = arith.constant 0 : i32
    %c0_i32_0 = arith.constant 0 : i32
    return %arg0, %c0_i32 : i32, i32
  }
  func.func @transform_1(%arg0: i32) -> (i32, i32) {
    %c0_i32 = arith.constant 0 : i32
    %c0_i32_0 = arith.constant 0 : i32
    return %arg0, %c0_i32 : i32, i32
  }
}

</mosaic_0001>

<bundles_post_ra>
// kernel: tpu_custom_call.1
= control target key start
LH: loop header
LB: loop body
LE: loop exit
PB: predicated region body
PF: predicated region fallthrough
CT: control target
= control target key end

     0   :  { %6 = vsyncpa [#allocation3], 0  ;;  %s136_s0 = inlined_call_operand.hbm [shape: f32[2,1024], index: 0, kind: input, shape index: {}]   ;;  %s137_s1 = inlined_call_operand.hbm [shape: f32[2,1024], index: 1, kind: output, shape index: {}]  }
   0x1   :  { %7 = vsyncpa [#allocation4], 0  ;;  %s100_s6 = smov [#allocation2]   ;;  %s52_s10 = scalar_lea.hbm %s136_s0, 256 }
   0x2   :  { %s14_s7 = sshll.u32 %s100_s6, 4  ;;  %p53_p0 = scmp.ne.s32.totalorder %s136_s0, %s52_s10  ;;  %s15_s7 = int_to_ptr.vmem [resolvable:$true] %s14_s7 }
   0x3   :  { %p56_p1 = scmp.lt.u32.totalorder %s52_s10, %s136_s0 }
   0x5   :  { %p58_p2 = pnand %p56_p1, %p53_p0 }
   0x7   :  { %61 = shalt.err (!%p58_p2)
}
   0x8   :  { %s62_s15 = scalar_lea.vmem %s15_s7, 256  ;;  %p67_p4 = scmp.lt.s32.totalorder %s15_s7, %s15_s7 }
   0x9   :  { %p63_p3 = scmp.ne.s32.totalorder %s15_s7, %s62_s15  ;;  %p68_p5 = scmp.lt.s32.totalorder %s62_s15, %s62_s15 }
   0xb   :  { %p69_p6 = por %p68_p5, %p67_p4 }
   0xd   :  { %p70_p7 = pnand %p69_p6, %p63_p3 }
   0xf   :  { %73 = shalt.err (!%p70_p7)
}
  0x10   :  { %17 = dma.hbm_to_vmem [thread:$0]  %s136_s0, 256, %s15_s7, [#allocation3]  }
  0x11   :  { %96 = dma.done.wait [#allocation3], 256  }
  0x12   :  { %97 = vsyncadd [#allocation3], 4294967040  ;;  %v21_v0 = vld [vmem:[#allocation2] sm:$0xff]  ;;  %v22_v1 = vld [vmem:[#allocation2 + $0x8] sm:$0xff]  ;;  %s101_s18 = smov [#allocation5]  }
  0x13   :  { %48 = vtanh.f32 %v21_v0  ;;  %s37_s19 = sshll.u32 %s101_s18, 4  ;;  %s38_s19 = int_to_ptr.vmem [resolvable:$true] %s37_s19 }
  0x14   :  { %50 = vtanh.f32 %v22_v1  ;;  %s74_s20 = scalar_lea.vmem %s38_s19, 256  ;;  %p79_p9 = scmp.lt.s32.totalorder %s38_s19, %s38_s19 }
  0x15   :  { %p75_p8 = scmp.ne.s32.totalorder %s38_s19, %s74_s20  ;;  %p80_p10 = scmp.lt.s32.totalorder %s74_s20, %s74_s20 }
  0x17   :  { %p81_p11 = por %p80_p10, %p79_p9 }
  0x19   :  { %p82_p12 = pnand %p81_p11, %p75_p8 }
  0x1d   :  { %v49_v2 = vpop.eup %48 }
  0x1e   :  { %v51_v3 = vpop.eup %50  ;;  %v25_v4 = vmul.f32 2.0, %v49_v2 }
  0x1f   :  { %v26_v5 = vmul.f32 2.0, %v51_v3 }
  0x20   :  { %v27_v6 = vadd.f32 0.5, %v25_v4 }
  0x21   :  { %v28_v7 = vadd.f32 0.5, %v26_v5 }
  0x22   :  { %29 = vst [vmem:[#allocation5] sm:$0xff] %v27_v6 }
  0x23   :  { %30 = vst [vmem:[#allocation5 + $0x8] sm:$0xff] %v28_v7 }
  0x24   :  { %85 = shalt.err (!%p82_p12)
}
  0x25   :  { %s86_s22 = scalar_lea.hbm %s137_s1, 256 }
  0x26   :  { %p87_p13 = scmp.ne.s32.totalorder %s137_s1, %s86_s22  ;;  %p90_p0 = scmp.lt.u32.totalorder %s86_s22, %s137_s1 }
  0x28   :  { %p92_p1 = pnand %p90_p0, %p87_p13 }
  0x2a   :  { %95 = shalt.err (!%p92_p1)
}
  0x2b   :  { %40 = dma.vmem_to_hbm [thread:$0]  %s38_s19, 256, %s137_s1, [#allocation4]  }
  0x2c   :  { %98 = dma.done.wait [#allocation4], 256  }
  0x2d   :  { %99 = vsyncadd [#allocation4], 4294967040 }
  0x2e   :  { %44 = vsyncpa [#allocation3], 1 }
  0x2f   :  { %45 = vsyncpa [#allocation4], 1 }

</bundles_post_ra>
